<compile_context>
chip_gen: v7x
topology: tpu7x:2x2x1
jax: 0.10.0
libtpu: 0.0.40
codegen_flags: <defaults>
</compile_context>

<pallas_src>
import math

import jax
import jax.numpy as jnp
from jax import lax
from jax.experimental import pallas as pl
from jax.experimental.pallas import tpu as pltpu


def _mu_kernel(x_ref, wt_ref, mu_ref):
    # mu = x @ W.T with W stored pre-transposed as wt = (input_dim, action_dim),
    # canonical ((1,),(0,)) contraction -> no in-kernel weight relayout.
    mu_ref[...] = lax.dot_general(
        x_ref[...],                       # (1, input_dim)
        wt_ref[...],                      # (input_dim, action_dim)
        dimension_numbers=(((1,), (0,)), ((), ())),
        preferred_element_type=jnp.float32,
        precision=lax.Precision.HIGHEST,  # true fp32 accumulation (torch parity)
    )                                     # -> (1, action_dim)


def _act_kernel(x_ref, wt_ref, std_ref, eps_ref, mu_ref, a_ref, logp_ref):
    # Fused policy step: GEMV + reparameterized Normal sample + mean log_prob.
    mu = lax.dot_general(
        x_ref[...], wt_ref[...],
        dimension_numbers=(((1,), (0,)), ((), ())),
        preferred_element_type=jnp.float32,
        precision=lax.Precision.HIGHEST,
    )                                     # (1, action_dim)
    std = std_ref[...]                    # (1, action_dim)
    eps = eps_ref[...]                    # (1, action_dim) ~ N(0, 1)
    a = mu + std * eps                    # Normal(mu, std).sample()
    # Normal(mu, std).log_prob(a) == -0.5*eps^2 - log(std) - 0.5*log(2*pi)
    logp = -0.5 * (eps * eps) - jnp.log(std) - 0.5 * math.log(2.0 * math.pi)
    mu_ref[...] = mu
    a_ref[...] = a
    logp_ref[...] = jnp.mean(logp, keepdims=True)   # (1, 1) == .mean() over A


_VMEM = pl.BlockSpec(memory_space=pltpu.MemorySpace.VMEM)


def prepare_linear_policy_params(weight, std):
    """One-time parameter prep (call at init/load, NOT per step).

    weight: (action_dim, input_dim) nn.Linear layout (already *0.01 scaled).
    std:    (action_dim,)
    Returns:
      wt:      f32 (input_dim, action_dim)  -- transposed + cast once here.
      std_row: f32 (1, action_dim)
    """
    wt = jnp.asarray(weight, jnp.float32).T
    std_row = jnp.asarray(std, jnp.float32).reshape(1, -1)
    return wt, std_row


def _flatten_state(x, input_dim):
    # x.view(1, -1).float()
    x_flat = jnp.reshape(x, (1, -1)).astype(jnp.float32)
    assert x_flat.shape == (1, input_dim), (x_flat.shape, input_dim)
    return x_flat


def linear_policy_forward(x, wt):
    """mu = x.view(1,-1).float() @ W.T (bias-free).  wt is the pre-transposed
    (input_dim, action_dim) f32 parameter from prepare_linear_policy_params."""
    input_dim, action_dim = wt.shape
    assert wt.dtype == jnp.float32, wt.dtype
    x_flat = _flatten_state(x, input_dim)
    return pl.pallas_call(
        _mu_kernel,
        out_shape=jax.ShapeDtypeStruct((1, action_dim), jnp.float32),
        in_specs=[_VMEM, _VMEM],
        out_specs=_VMEM,
    )(x_flat, wt)


def linear_policy_act(x, wt, std_row, key, deterministic=False):
    """Fused act(): returns (a, logp, mu) from a single pallas_call."""
    input_dim, action_dim = wt.shape
    assert wt.dtype == jnp.float32 and std_row.dtype == jnp.float32
    if deterministic:
        mu = linear_policy_forward(x, wt)
        return mu, jnp.float32(0.0), mu
    x_flat = _flatten_state(x, input_dim)
    # TODO(synk): eps is drawn with jax.random under the same jit; only the
    # noise-add / log_prob math is in-kernel (the RNG itself stays in XLA).
    eps = jax.random.normal(key, (1, action_dim), dtype=jnp.float32)
    mu, a, logp = pl.pallas_call(
        _act_kernel,
        out_shape=(
            jax.ShapeDtypeStruct((1, action_dim), jnp.float32),   # mu
            jax.ShapeDtypeStruct((1, action_dim), jnp.float32),   # a
            jax.ShapeDtypeStruct((1, 1), jnp.float32),            # mean log_prob
        ),
        in_specs=[_VMEM, _VMEM, _VMEM, _VMEM],
        out_specs=(_VMEM, _VMEM, _VMEM),
    )(x_flat, wt, std_row, eps)
    return a, logp[0, 0], mu


if __name__ == "__main__":
    input_dim, action_dim = 32, 8

    key = jax.random.PRNGKey(0)
    k_w, k_x, k_eps = jax.random.split(key, 3)

    # nn.Linear default init U(-1/sqrt(in), 1/sqrt(in)), then the module's *0.01.
    bound = 1.0 / math.sqrt(input_dim)
    weight = 0.01 * jax.random.uniform(
        k_w, (action_dim, input_dim), minval=-bound, maxval=bound,
        dtype=jnp.float32)
    std = 0.1 * jnp.ones((action_dim,), jnp.float32)

    # One-time parameter prep (cast + transpose hoisted out of the step path).
    wt, std_row = prepare_linear_policy_params(weight, std)

    # x is deliberately 2-D: forward() flattens it via view(1, -1).
    x = jax.random.normal(k_x, (4, 8), dtype=jnp.float32)   # 4*8 == input_dim

    # Keep flatten + pallas_call under one jit (no eager per-step dispatch).
    fwd = jax.jit(linear_policy_forward)
    act = jax.jit(linear_policy_act, static_argnames=("deterministic",))

    mu = jax.block_until_ready(fwd(x, wt))
    a, logp, mu2 = act(x, wt, std_row, k_eps)
    a = jax.block_until_ready(a)

    # Plain-JAX reference (HIGHEST precision to match the in-kernel fp32 dot).
    x_flat = jnp.reshape(x, (1, -1)).astype(jnp.float32)
    mu_ref = lax.dot_general(x_flat, wt, (((1,), (0,)), ((), ())),
                             precision=lax.Precision.HIGHEST)
    eps_ref = jax.random.normal(k_eps, (1, action_dim), dtype=jnp.float32)
    a_ref = mu_ref + std_row * eps_ref
    logp_ref = jnp.mean(
        -0.5 * ((a_ref - mu_ref) / std_row) ** 2
        - jnp.log(std_row) - 0.5 * math.log(2.0 * math.pi))

    assert mu.shape == (1, action_dim)
    assert jnp.allclose(mu, mu_ref, atol=1e-6, rtol=1e-6)
    assert jnp.allclose(mu2, mu_ref, atol=1e-6, rtol=1e-6)
    assert jnp.allclose(a, a_ref, atol=1e-6, rtol=1e-6)
    assert jnp.allclose(logp, logp_ref, atol=1e-5, rtol=1e-5)

    # Deterministic path: (mu, 0.0).
    a_det, logp_det, _ = act(x, wt, std_row, k_eps, deterministic=True)
    assert jnp.allclose(jax.block_until_ready(a_det), mu_ref, atol=1e-6)
    assert float(logp_det) == 0.0

    print("KERNEL_OK")
</pallas_src>

<mosaic_0001>
module attributes {stable_mosaic.version = 11 : i64} {
  func.func @_mu_kernel(%arg0: memref<1x32xf32, #tpu.memory_space<vmem>>, %arg1: memref<32x8xf32, #tpu.memory_space<vmem>>, %arg2: memref<1x8xf32, #tpu.memory_space<vmem>>) attributes {dimension_semantics = [], scalar_prefetch = 0 : i64, scratch_operands = 0 : i64, tpu.core_type = #tpu.core_type<tc>} {
    %c0 = arith.constant 0 : index
    %c0_0 = arith.constant 0 : index
    %0 = vector.load %arg0[%c0, %c0_0] : memref<1x32xf32, #tpu.memory_space<vmem>>, vector<1x32xf32>
    %c0_1 = arith.constant 0 : index
    %c0_2 = arith.constant 0 : index
    %1 = vector.load %arg1[%c0_1, %c0_2] : memref<32x8xf32, #tpu.memory_space<vmem>>, vector<32x8xf32>
    %cst = arith.constant dense<0.000000e+00> : vector<1x8xf32>
    %2 = tpu.matmul %0, %1, %cst {dimension_numbers = #tpu.dot_dimension_numbers<[1], [0], [0], [1], [0, 0, 1, 1], [], []>, precision = #tpu.contract_precision<fp32>} : vector<1x32xf32>, vector<32x8xf32>, vector<1x8xf32> -> vector<1x8xf32>
    %c0_3 = arith.constant 0 : index
    %c0_4 = arith.constant 0 : index
    %3 = vector.load %arg2[%c0_3, %c0_4] : memref<1x8xf32, #tpu.memory_space<vmem>>, vector<1x8xf32>
    tpu.vector_store %arg2[%c0_3, %c0_4], %2 {strides = array<i32>} : memref<1x8xf32, #tpu.memory_space<vmem>>, vector<1x8xf32>,
    return
  }
}

</mosaic_0001>

<bundles_post_ra>
// kernel: linear_policy_forward.1
= control target key start
LH: loop header
LB: loop body
LE: loop exit
PB: predicated region body
PF: predicated region fallthrough
CT: control target
= control target key end

     0   :  { %v691_v3 = vmov 0.0|0.0   ;;  %vm692_vm0 = vmmov 0   ;;  %v693_v10 = vmov 0.0   ;;  %vm17_vm1 = vcmask 261120   ;;  %s755_s0 = inlined_call_operand.vmem [shape: f32[1,32], index: 0, kind: input, shape index: {}]   ;;  %s756_s1 = inlined_call_operand.vmem [shape: f32[32,8], index: 1, kind: input, shape index: {}]   ;;  %s757_s2 = inlined_call_operand.hbm [shape: f32[1,8], index: 2, kind: output, shape index: {}]  }
   0x1   :  { %v13_v0 = vld [vmem:[%s756_s1] sm:$0xff]  ;;  %v14_v1 = vld [vmem:[%s756_s1 + $0x8] sm:$0xff]  ;;  %v15_v2 = vld [vmem:[%s756_s1 + $0x10] sm:$0xff]  ;;  %618 = vmatprep.subr.bf16.mxu1 %v691_v3  ;;  %636 = vmatprep.subr.bf16.mxu0 %v691_v3 }
   0x2   :  { %v22_v4 = vand.u32 4294901760, %v13_v0  ;;  %v25_v5 = vand.u32 4294901760, %v14_v1  ;;  %v16_v6 = vld [vmem:[%s756_s1 + $0x18] sm:$0xff]  ;;  %v28_v7 = vand.u32 4294901760, %v15_v2  ;;  %v12_v8 = vld [vmem:[%s755_s0] sm:$0x1]  ;;  %560 = vmatprep.mubr.msk.f32.mxu1 %vm692_vm0, %v693_v10  ;;  %593 = vmatprep.mubr.msk.f32.mxu0 %vm692_vm0, %v693_v10 }
   0x3   :  { %v31_v9 = vand.u32 4294901760, %v16_v6 }
   0x4   :  { %7 = vsyncpa [#allocation3], 0  ;;  %v619_v11 = vpack.c.bf16 %v25_v5, %v22_v4  ;;  %v102_v12 = vsub.f32 %v13_v0, %v22_v4  ;;  %v109_v13 = vsub.f32 %v14_v1, %v25_v5  ;;  %v116_v14 = vsub.f32 %v15_v2, %v28_v7  ;;  %s694_s0 = smov [#allocation2]  }
   0x5   :  { %v622_v15 = vpack.c.bf16 %v31_v9, %v28_v7  ;;  %v123_v16 = vsub.f32 %v16_v6, %v31_v9  ;;  %v19_v17 = vsel %vm17_vm1, %v12_v8, 0  ;;  %s514_s1 = sshll.u32 %s694_s0, 4  ;;  %vm506_vm2 = vcmask 57344   ;;  %s515_s1 = int_to_ptr.vmem [resolvable:$true] %s514_s1 }
   0x6   :  { %620 = vmatpush3.bf16.msra.mxu1 %v619_v11  ;;  %638 = vmatpush3.bf16.msra.mxu0 %v619_v11  ;;  %v90_v18 = vand.u32 4294901760, %v19_v17  ;;  %v103_v19 = vand.u32 4294901760, %v102_v12  ;;  %v110_v20 = vand.u32 4294901760, %v109_v13  ;;  %v117_v21 = vand.u32 4294901760, %v116_v14  ;;  %s667_s19 = scalar_lea.vmem %s515_s1, 16  ;;  %s671_s20 = scalar_lea.vmem %s515_s1, 32 }
   0x7   :  { %621 = vmatprep.subr.bf16.mxu1 %v691_v3  ;;  %639 = vmatprep.subr.bf16.mxu0 %v691_v3  ;;  %v124_v22 = vand.u32 4294901760, %v123_v16  ;;  %v631_v39 = vpack.c.bf16 %v109_v13, %v102_v12  ;;  %v634_v40 = vpack.c.bf16 %v123_v16, %v116_v14  ;;  %p668_p0 = scmp.ne.s32.totalorder %s515_s1, %s667_s19  ;;  %p672_p1 = scmp.lt.s32.totalorder %s515_s1, %s515_s1 }
   0x8   :  { %v91_v23 = vsub.f32 %v19_v17, %v90_v18  ;;  %v104_v24 = vsub.f32 %v102_v12, %v103_v19  ;;  %v111_v25 = vsub.f32 %v109_v13, %v110_v20  ;;  %v118_v26 = vsub.f32 %v116_v14, %v117_v21  ;;  %p673_p2 = scmp.lt.s32.totalorder %s671_s20, %s667_s19 }
   0x9   :  { %v125_v27 = vsub.f32 %v123_v16, %v124_v22  ;;  %v643_v31 = vpack.c.bf16 %v110_v20, %v103_v19  ;;  %v646_v37 = vpack.c.bf16 %v124_v22, %v117_v21 }
   0xa   :  { %623 = vmatpush3.bf16.msra.mxu1 %v622_v15  ;;  %641 = vmatpush3.bf16.msra.mxu0 %v622_v15  ;;  %v92_v28 = vand.u32 4294901760, %v91_v23  ;;  %v105_v29 = vand.u32 4294901760, %v104_v24  ;;  %v112_v30 = vand.u32 4294901760, %v111_v25  ;;  %v119_v34 = vand.u32 4294901760, %v118_v26  ;;  %p674_p3 = por %p673_p2, %p672_p1 }
   0xb   :  { %624 = vmatprep.subr.bf16.mxu1 %v691_v3  ;;  %642 = vmatprep.subr.bf16.mxu0 %v691_v3  ;;  %v126_v35 = vand.u32 4294901760, %v125_v27 }
   0xc   :  { %v93_v32 = vsub.f32 %v91_v23, %v92_v28  ;;  %v625_v33 = vpack.c.bf16 %v112_v30, %v105_v29  ;;  %p675_p4 = pnand %p674_p3, %p668_p0 }
   0xd   :  { %594 = vmatmul.mubr.f32.vlgmr.msra.gmra.mrb[0].mxu0 %v92_v28  ;;  %v628_v38 = vpack.c.bf16 %v126_v35, %v119_v34 }
   0xe   :  { %v94_v36 = vand.u32 4294901760, %v93_v32  ;;  %644 = vmatpush3.bf16.msra.mxu0 %v643_v31  ;;  %604 = vmatprep.mubr.msk.f32.mxu0 %vm692_vm0, %v693_v10 }
   0xf   :  { %645 = vmatprep.subr.bf16.mxu0 %v691_v3 }
  0x10   :  { %561 = vmatmul.mubr.f32.vlgmr.msra.gmra.mrb[0].mxu1 %v94_v36 }
  0x11   :  { %626 = vmatpush3.bf16.msra.mxu1 %v625_v33  ;;  %571 = vmatprep.mubr.msk.f32.mxu1 %vm692_vm0, %v693_v10 }
  0x12   :  { %627 = vmatprep.subr.bf16.mxu1 %v691_v3  ;;  %647 = vmatpush3.bf16.msra.mxu0 %v646_v37 }
  0x13   :  { %648 = vmatprep.subr.bf16.mxu0 %v691_v3 }
  0x15   :  { %629 = vmatpush3.bf16.msra.mxu1 %v628_v38  ;;  %605 = vmatmul.mubr.f32.vlgmr.msra.gmra.mrb[0].mxu0 %v90_v18 }
  0x16   :  { %630 = vmatprep.subr.bf16.mxu1 %v691_v3  ;;  %650 = vmatpush3.bf16.msra.mxu0 %v619_v11 }
  0x17   :  { %651 = vmatprep.subr.bf16.mxu0 %v691_v3  ;;  %615 = vmatprep.mubr.msk.f32.mxu0 %vm692_vm0, %v693_v10 }
  0x18   :  { %572 = vmatmul.mubr.f32.vlgmr.msra.gmra.mrb[0].mxu1 %v90_v18 }
  0x19   :  { %632 = vmatpush3.bf16.msra.mxu1 %v631_v39  ;;  %582 = vmatprep.mubr.msk.f32.mxu1 %vm692_vm0, %v693_v10 }
  0x1a   :  { %633 = vmatprep.subr.bf16.mxu1 %v691_v3  ;;  %653 = vmatpush3.bf16.msra.mxu0 %v622_v15 }
  0x1d   :  { %635 = vmatpush3.bf16.msra.mxu1 %v634_v40  ;;  %616 = vmatmul.mubr.f32.vlgmr.msra.gmra.mrb[0].mxu0 %v90_v18 }
  0x20   :  { %583 = vmatmul.mubr.f32.vlgmr.msra.gmra.mrb[0].mxu1 %v91_v23 }
  0xf0   :  { %v502_v41 = vpop.f32.mrb[0].mxu0 }
  0xf1   :  { %v617_v42 = vpop.f32.mrb[1].mxu0 }
  0xf3   :  { %v267_v43 = vpop.f32.mrb[0].mxu1 }
  0xf4   :  { %v654_v44 = vadd.f32 %v502_v41, %v267_v43  ;;  %v584_v45 = vpop.f32.mrb[1].mxu1 }
  0xf6   :  { %507 = vst.msk [vmem:[#allocation2] sm:$0x1] %vm506_vm2, %v654_v44 }
  0xf7   :  { %678 = shalt.err (!%p675_p4)
}
  0xf8   :  { %s679_s23 = scalar_lea.hbm %s757_s2, 16 }
  0xf9   :  { %p680_p5 = scmp.ne.s32.totalorder %s757_s2, %s679_s23  ;;  %p683_p6 = scmp.lt.u32.totalorder %s679_s23, %s757_s2 }
  0xfb   :  { %p685_p7 = pnand %p683_p6, %p680_p5 }
  0xfd   :  { %688 = shalt.err (!%p685_p7)
}
  0xfe   :  { %517 = dma.vmem_to_hbm [thread:$0]  %s515_s1, 16, %s757_s2, [#allocation3]  }
  0xff   :  { %689 = dma.done.wait [#allocation3], 16  }
 0x100   :  { %690 = vsyncadd [#allocation3], 4294967280 }
 0x101   :  { %521 = vsyncpa [#allocation3], 1 }

</bundles_post_ra>
